<compile_context>
chip_gen: v7x
topology: tpu7x:2x2x1
jax: 0.10.0
libtpu: 0.0.40
codegen_flags: <defaults>
</compile_context>

<pallas_src>
import jax
import jax.numpy as jnp
from jax.experimental import pallas as pl
from jax.experimental.pallas import tpu as pltpu


def mlp_kernel(x_ref, w1_ref, b1_ref, w2_ref, b2_ref, o_ref):
    # fc1: (TB, F) bf16 @ (F, Hp) bf16 -> f32 accum, + f32 bias.
    h = jnp.dot(x_ref[...], w1_ref[...], preferred_element_type=jnp.float32)
    h = h + b1_ref[...]
    # Tanh activation (module names it "ReLU" but it is nn.Tanh) — f32 EUP.
    h = jnp.tanh(h)
    # fc2: (TB, Hp) bf16 @ (Hp, Cp) bf16 -> f32 accum, + f32 bias.
    logits = jnp.dot(h.astype(jnp.bfloat16), w2_ref[...],
                     preferred_element_type=jnp.float32)
    logits = logits + b2_ref[...]  # padded classes carry -1e30 -> prob 0
    # Numerically-stable softmax over classes (axis=1), f32 math.
    m = jnp.max(logits, axis=1, keepdims=True)
    e = jnp.exp(logits - m)
    denom = jnp.sum(e, axis=1, keepdims=True)
    o_ref[...] = (e * pl.reciprocal(denom, approx=True)).astype(o_ref.dtype)


def _round_up(x, m):
    return ((x + m - 1) // m) * m


def net_forward(x, w1, b1, w2, b2, *, block_b=512):
    """x: (B, F) f32; w1: (F, H); b1: (1, H); w2: (H, C); b2: (1, C) -> (B, C) f32."""
    B, F = x.shape
    H = w1.shape[1]
    C = w2.shape[1]
    Hp = _round_up(H, 128)   # lane-dense hidden dim
    Cp = _round_up(C, 128)   # lane-dense output (unmasked vst)

    # Pad / cast parameters. Zero-pad w1/b1/w2; pad b2 with a huge negative so
    # padded logits softmax to exactly 0 (no probability-mass leak).
    w1p = jnp.zeros((F, Hp), jnp.bfloat16).at[:, :H].set(w1.astype(jnp.bfloat16))
    b1p = jnp.zeros((1, Hp), jnp.float32).at[:, :H].set(b1.astype(jnp.float32))
    w2p = jnp.zeros((Hp, Cp), jnp.bfloat16).at[:H, :C].set(w2.astype(jnp.bfloat16))
    b2p = jnp.full((1, Cp), -1e30, jnp.float32).at[:, :C].set(b2.astype(jnp.float32))

    # Batch tile: multiple of 8 (f32 sublanes), capped so the double-buffered
    # x / out tiles stay within ~16 MiB (fits v7x's 64 MiB VMEM with headroom).
    bytes_per_row = F * 2 + Cp * 4          # bf16 x row + f32 out row
    max_tb = max(8, ((16 * 1024 * 1024) // (2 * bytes_per_row)) // 8 * 8)
    TB = min(_round_up(block_b, 8), max_tb, _round_up(B, 8))
    B_pad = _round_up(B, TB)

    xb = x.astype(jnp.bfloat16)
    if B_pad != B:
        xb = jnp.zeros((B_pad, F), jnp.bfloat16).at[:B].set(xb)

    out = pl.pallas_call(
        mlp_kernel,
        out_shape=jax.ShapeDtypeStruct((B_pad, Cp), jnp.float32),
        grid=(B_pad // TB,),
        in_specs=[
            pl.BlockSpec((TB, F), lambda i: (i, 0)),     # x: tiled over batch
            pl.BlockSpec((F, Hp), lambda i: (0, 0)),     # w1: VMEM-resident
            pl.BlockSpec((1, Hp), lambda i: (0, 0)),     # b1
            pl.BlockSpec((Hp, Cp), lambda i: (0, 0)),    # w2
            pl.BlockSpec((1, Cp), lambda i: (0, 0)),     # b2
        ],
        out_specs=pl.BlockSpec((TB, Cp), lambda i: (i, 0)),
        compiler_params=pltpu.CompilerParams(
            dimension_semantics=("parallel",),           # megacore on v7x
        ),
    )(xb, w1p, b1p, w2p, b2p)

    return out[:B, :C]


def init_params(key, num_feats, hidden_size, num_classes):
    """Deterministic init mimicking PyTorch Linear (U[-1/sqrt(fan_in), 1/sqrt(fan_in)])."""
    k1, k2, k3, k4 = jax.random.split(key, 4)
    bound1 = 1.0 / jnp.sqrt(num_feats)
    bound2 = 1.0 / jnp.sqrt(hidden_size)
    # Stored already transposed relative to torch's (out, in) convention.
    w1 = jax.random.uniform(k1, (num_feats, hidden_size), jnp.float32, -bound1, bound1)
    b1 = jax.random.uniform(k2, (1, hidden_size), jnp.float32, -bound1, bound1)
    w2 = jax.random.uniform(k3, (hidden_size, num_classes), jnp.float32, -bound2, bound2)
    b2 = jax.random.uniform(k4, (1, num_classes), jnp.float32, -bound2, bound2)
    return w1, b1, w2, b2


def ref_forward(x, w1, b1, w2, b2):
    """Pure-JAX reference using the same bf16 matmul inputs as the kernel."""
    xb = x.astype(jnp.bfloat16)
    h = jnp.dot(xb, w1.astype(jnp.bfloat16), preferred_element_type=jnp.float32) + b1
    h = jnp.tanh(h)
    logits = jnp.dot(h.astype(jnp.bfloat16), w2.astype(jnp.bfloat16),
                     preferred_element_type=jnp.float32) + b2
    return jax.nn.softmax(logits, axis=1)


if __name__ == "__main__":
    # Small shapes consistent with the module's forward.
    batch, num_feats, hidden_size, num_classes = 8, 32, 64, 16

    key = jax.random.PRNGKey(0)
    kx, kp = jax.random.split(key)
    x = jax.random.normal(kx, (batch, num_feats), jnp.float32)
    w1, b1, w2, b2 = init_params(kp, num_feats, hidden_size, num_classes)

    out = net_forward(x, w1, b1, w2, b2)
    jax.block_until_ready(out)

    assert out.shape == (batch, num_classes)
    # Rows are valid probability distributions.
    assert jnp.allclose(jnp.sum(out, axis=1), 1.0, atol=5e-3)
    # Match the bf16-matmul reference (approx-reciprocal / MXU rounding slack).
    ref = ref_forward(x, w1, b1, w2, b2)
    assert jnp.allclose(out, ref, atol=5e-3, rtol=5e-3)

    print("KERNEL_OK")
</pallas_src>

<mosaic_0001>
module attributes {stable_mosaic.version = 11 : i64} {
  func.func @mlp_kernel(%arg0: i32, %arg1: memref<8x32xbf16, #tpu.memory_space<vmem>>, %arg2: memref<32x128xbf16, #tpu.memory_space<vmem>>, %arg3: memref<1x128xf32, #tpu.memory_space<vmem>>, %arg4: memref<128x128xbf16, #tpu.memory_space<vmem>>, %arg5: memref<1x128xf32, #tpu.memory_space<vmem>>, %arg6: memref<8x128xf32, #tpu.memory_space<vmem>>) attributes {dimension_semantics = [#tpu.dimension_semantics<parallel>], iteration_bounds = array<i64: 1>, scalar_prefetch = 0 : i64, scratch_operands = 0 : i64, tpu.core_type = #tpu.core_type<tc>, window_params = [{transform_indices = @transform_0, window_bounds = array<i64: 8, 32>}, {pipeline_mode = #tpu.pipeline_mode<synchronous>, transform_indices = @transform_1, window_bounds = array<i64: 32, 128>}, {pipeline_mode = #tpu.pipeline_mode<synchronous>, transform_indices = @transform_2, window_bounds = array<i64: 1, 128>}, {pipeline_mode = #tpu.pipeline_mode<synchronous>, transform_indices = @transform_3, window_bounds = array<i64: 128, 128>}, {pipeline_mode = #tpu.pipeline_mode<synchronous>, transform_indices = @transform_4, window_bounds = array<i64: 1, 128>}, {transform_indices = @transform_5, window_bounds = array<i64: 8, 128>}]} {
    %c0 = arith.constant 0 : index
    %c0_0 = arith.constant 0 : index
    %0 = vector.load %arg1[%c0, %c0_0] : memref<8x32xbf16, #tpu.memory_space<vmem>>, vector<8x32xbf16>
    %c0_1 = arith.constant 0 : index
    %c0_2 = arith.constant 0 : index
    %1 = vector.load %arg2[%c0_1, %c0_2] : memref<32x128xbf16, #tpu.memory_space<vmem>>, vector<32x128xbf16>
    %cst = arith.constant dense<0.000000e+00> : vector<8x128xf32>
    %2 = tpu.matmul %0, %1, %cst {dimension_numbers = #tpu.dot_dimension_numbers<[1], [0], [0], [1], [0, 0, 1, 1], [], []>} : vector<8x32xbf16>, vector<32x128xbf16>, vector<8x128xf32> -> vector<8x128xf32>
    %c0_3 = arith.constant 0 : index
    %c0_4 = arith.constant 0 : index
    %3 = vector.load %arg3[%c0_3, %c0_4] : memref<1x128xf32, #tpu.memory_space<vmem>>, vector<1x128xf32>
    %4 = vector.broadcast %3 : vector<1x128xf32> to vector<8x128xf32>
    %5 = arith.addf %2, %4 : vector<8x128xf32>
    %6 = math.tanh %5 : vector<8x128xf32>
    %7 = arith.truncf %6 : vector<8x128xf32> to vector<8x128xbf16>
    %c0_5 = arith.constant 0 : index
    %c0_6 = arith.constant 0 : index
    %8 = vector.load %arg4[%c0_5, %c0_6] : memref<128x128xbf16, #tpu.memory_space<vmem>>, vector<128x128xbf16>
    %cst_7 = arith.constant dense<0.000000e+00> : vector<8x128xf32>
    %9 = tpu.matmul %7, %8, %cst_7 {dimension_numbers = #tpu.dot_dimension_numbers<[1], [0], [0], [1], [0, 0, 1, 1], [], []>} : vector<8x128xbf16>, vector<128x128xbf16>, vector<8x128xf32> -> vector<8x128xf32>
    %c0_8 = arith.constant 0 : index
    %c0_9 = arith.constant 0 : index
    %10 = vector.load %arg5[%c0_8, %c0_9] : memref<1x128xf32, #tpu.memory_space<vmem>>, vector<1x128xf32>
    %11 = vector.broadcast %10 : vector<1x128xf32> to vector<8x128xf32>
    %12 = arith.addf %9, %11 : vector<8x128xf32>
    %cst_10 = arith.constant dense<0xFF800000> : vector<8xf32>
    %13 = vector.multi_reduction <maximumf>, %12, %cst_10 [1] : vector<8x128xf32> to vector<8xf32>
    %14 = vector.shape_cast %13 : vector<8xf32> to vector<8x1xf32>
    %15 = vector.broadcast %14 : vector<8x1xf32> to vector<8x128xf32>
    %16 = arith.subf %12, %15 : vector<8x128xf32>
    %17 = math.exp %16 : vector<8x128xf32>
    %cst_11 = arith.constant dense<0.000000e+00> : vector<8xf32>
    %18 = vector.multi_reduction <add>, %17, %cst_11 [1] : vector<8x128xf32> to vector<8xf32>
    %19 = vector.shape_cast %18 : vector<8xf32> to vector<8x1xf32>
    %20 = tpu.reciprocal %19 {approx = true} : vector<8x1xf32> -> vector<8x1xf32>
    %21 = vector.broadcast %20 : vector<8x1xf32> to vector<8x128xf32>
    %22 = arith.mulf %17, %21 : vector<8x128xf32>
    %c0_12 = arith.constant 0 : index
    %c0_13 = arith.constant 0 : index
    %23 = vector.load %arg6[%c0_12, %c0_13] : memref<8x128xf32, #tpu.memory_space<vmem>>, vector<8x128xf32>
    tpu.vector_store %arg6[%c0_12, %c0_13], %22 {strides = array<i32>} : memref<8x128xf32, #tpu.memory_space<vmem>>, vector<8x128xf32>,
    return
  }
  func.func @transform_0(%arg0: i32) -> (i32, i32) {
    %c0_i32 = arith.constant 0 : i32
    %c0_i32_0 = arith.constant 0 : i32
    return %arg0, %c0_i32 : i32, i32
  }
  func.func @transform_1(%arg0: i32) -> (i32, i32) {
    %c0_i32 = arith.constant 0 : i32
    %c0_i32_0 = arith.constant 0 : i32
    %c0_i32_1 = arith.constant 0 : i32
    return %c0_i32, %c0_i32_0 : i32, i32
  }
  func.func @transform_2(%arg0: i32) -> (i32, i32) {
    %c0_i32 = arith.constant 0 : i32
    %c0_i32_0 = arith.constant 0 : i32
    %c0_i32_1 = arith.constant 0 : i32
    return %c0_i32, %c0_i32_0 : i32, i32
  }
  func.func @transform_3(%arg0: i32) -> (i32, i32) {
    %c0_i32 = arith.constant 0 : i32
    %c0_i32_0 = arith.constant 0 : i32
    %c0_i32_1 = arith.constant 0 : i32
    return %c0_i32, %c0_i32_0 : i32, i32
  }
  func.func @transform_4(%arg0: i32) -> (i32, i32) {
    %c0_i32 = arith.constant 0 : i32
    %c0_i32_0 = arith.constant 0 : i32
    %c0_i32_1 = arith.constant 0 : i32
    return %c0_i32, %c0_i32_0 : i32, i32
  }
  func.func @transform_5(%arg0: i32) -> (i32, i32) {
    %c0_i32 = arith.constant 0 : i32
    %c0_i32_0 = arith.constant 0 : i32
    return %arg0, %c0_i32 : i32, i32
  }
}

</mosaic_0001>

<bundles_post_ra>
// kernel: tpu_custom_call.1
= control target key start
LH: loop header
LB: loop body
LE: loop exit
PB: predicated region body
PF: predicated region fallthrough
CT: control target
= control target key end

     0   :  { %10 = vsyncpa [#allocation3], 0  ;;  %s537_s0 = inlined_call_operand.hbm [shape: bf16[8,32], index: 0, kind: input, shape index: {}]   ;;  %s538_s1 = inlined_call_operand.hbm [shape: bf16[32,128], index: 1, kind: input, shape index: {}]   ;;  %s539_s2 = inlined_call_operand.vmem [shape: f32[1,128], index: 2, kind: input, shape index: {}]   ;;  %s540_s3 = inlined_call_operand.hbm [shape: bf16[128,128], index: 3, kind: input, shape index: {}]   ;;  %s541_s4 = inlined_call_operand.vmem [shape: f32[1,128], index: 4, kind: input, shape index: {}]   ;;  %s542_s5 = inlined_call_operand.hbm [shape: f32[8,128], index: 5, kind: output, shape index: {}]  }
   0x1   :  { %11 = vsyncpa [#allocation6], 0 }
   0x2   :  { %12 = vsyncpa [#allocation4], 0  ;;  %s439_s18 = smov [#allocation5]   ;;  %s345_s22 = scalar_lea.hbm %s538_s1, 256 }
   0x3   :  { %s28_s19 = sshll.u32 %s439_s18, 4  ;;  %p346_p0 = scmp.ne.s32.totalorder %s538_s1, %s345_s22  ;;  %s29_s19 = int_to_ptr.vmem [resolvable:$true] %s28_s19 }
   0x4   :  { %p349_p1 = scmp.lt.u32.totalorder %s345_s22, %s538_s1 }
   0x6   :  { %p351_p2 = pnand %p349_p1, %p346_p0 }
   0x8   :  { %354 = shalt.err (!%p351_p2)
}
   0x9   :  { %s355_s27 = scalar_lea.vmem %s29_s19, 256  ;;  %p360_p4 = scmp.lt.s32.totalorder %s29_s19, %s29_s19 }
   0xa   :  { %p356_p3 = scmp.ne.s32.totalorder %s29_s19, %s355_s27  ;;  %p361_p5 = scmp.lt.s32.totalorder %s355_s27, %s355_s27 }
   0xc   :  { %p362_p6 = por %p361_p5, %p360_p4 }
   0xe   :  { %p363_p7 = pnand %p362_p6, %p356_p3 }
  0x10   :  { %366 = shalt.err (!%p363_p7)
}
  0x11   :  { %s440_s28 = smov 64   ;;  %s441_s29 = smov 4  }
  0x12   :  { %34 = dma.hbm_to_vmem [thread:$0]  %s538_s1, 256, %s29_s19, [#allocation6], %s440_s28, %s440_s28, %s441_s29  }
  0x13   :  { %s442_s7 = smov [#allocation2]   ;;  %s443_s9 = smov [#allocation7]  }
  0x14   :  { %s19_s8 = sshll.u32 %s442_s7, 4  ;;  %s42_s10 = sshll.u32 %s443_s9, 4  ;;  %s20_s8 = int_to_ptr.vmem [resolvable:$true] %s19_s8  ;;  %s43_s10 = int_to_ptr.vmem [resolvable:$true] %s42_s10 }
  0x15   :  { %s367_s13 = scalar_lea.hbm %s537_s0, 64 }
  0x16   :  { %p368_p8 = scmp.ne.s32.totalorder %s537_s0, %s367_s13  ;;  %p371_p9 = scmp.lt.u32.totalorder %s367_s13, %s537_s0 }
  0x18   :  { %p373_p10 = pnand %p371_p9, %p368_p8 }
  0x1a   :  { %376 = shalt.err (!%p373_p10)
}
  0x1b   :  { %s377_s1 = scalar_lea.vmem %s20_s8, 64  ;;  %p382_p12 = scmp.lt.s32.totalorder %s20_s8, %s20_s8 }
  0x1c   :  { %p378_p11 = scmp.ne.s32.totalorder %s20_s8, %s377_s1  ;;  %p383_p13 = scmp.lt.s32.totalorder %s377_s1, %s377_s1 }
  0x1e   :  { %p384_p0 = por %p383_p13, %p382_p12 }
  0x20   :  { %p385_p1 = pnand %p384_p0, %p378_p11 }
  0x22   :  { %388 = shalt.err (!%p385_p1)
}
  0x23   :  { %22 = dma.hbm_to_vmem [thread:$0]  %s537_s0, 64, %s20_s8, [#allocation3]  }
  0x24   :  { %s389_s22 = scalar_lea.hbm %s540_s3, 1024 }
  0x25   :  { %p390_p2 = scmp.ne.s32.totalorder %s540_s3, %s389_s22  ;;  %p393_p3 = scmp.lt.u32.totalorder %s389_s22, %s540_s3 }
  0x27   :  { %p395_p4 = pnand %p393_p3, %p390_p2 }
  0x29   :  { %398 = shalt.err (!%p395_p4)
}
  0x2a   :  { %s399_s27 = scalar_lea.vmem %s43_s10, 1024  ;;  %p404_p6 = scmp.lt.s32.totalorder %s43_s10, %s43_s10 }
  0x2b   :  { %p400_p5 = scmp.ne.s32.totalorder %s43_s10, %s399_s27  ;;  %p405_p7 = scmp.lt.s32.totalorder %s399_s27, %s399_s27 }
  0x2d   :  { %p406_p8 = por %p405_p7, %p404_p6 }
  0x2f   :  { %p407_p9 = pnand %p406_p8, %p400_p5 }
  0x31   :  { %410 = shalt.err (!%p407_p9)
}
  0x32   :  { %48 = dma.hbm_to_vmem [thread:$0]  %s540_s3, 1024, %s43_s10, [#allocation6], %s440_s28, %s440_s28, %s441_s29  }
  0x33   :  { %433 = dma.done.wait [#allocation3], 64  }
  0x34   :  { %434 = vsyncadd [#allocation3], 4294967232 }
  0x35   :  { %435 = dma.done.wait [#allocation6], 1280  }
  0x36   :  { %436 = vsyncadd [#allocation6], 4294966016  ;;  %v444_v0 = vmov 0.0   ;;  %vm445_vm0 = vmmov 0   ;;  %v329_v1 = vld [vmem:[#allocation5] sm:$0xff]   ;;  %v330_v2 = vld [vmem:[#allocation5 + $0x8] sm:$0xff]  }
  0x37   :  { %293 = vmatprep.subr.bf16.mxu0 %v444_v0  ;;  %297 = vmatprep.mubr.msk.bf16.mxu0 %vm445_vm0, %v444_v0  ;;  %v331_v3 = vld [vmem:[#allocation7] sm:$0xff]   ;;  %v332_v4 = vld [vmem:[#allocation7 + $0x8] sm:$0xff]   ;;  %vm85_vm1 = vcmask 261120   ;;  %v333_v6 = vld [vmem:[#allocation7 + $0x10] sm:$0xff]  }
  0x38   :  { %301 = vmatprep.subr.bf16.mxu1 %v444_v0  ;;  %317 = vmatprep.mubr.msk.bf16.mxu1 %vm445_vm0, %v444_v0  ;;  %v61_v5 = vld [vmem:[#allocation2] sm:$0xf]  ;;  %v334_v7 = vld [vmem:[#allocation7 + $0x18] sm:$0xff]   ;;  %v335_v8 = vld [vmem:[#allocation7 + $0x20] sm:$0xff]  }
  0x39   :  { %294 = vmatpush3.bf16.msra.mxu0 %v329_v1  ;;  %302 = vmatpush3.bf16.msra.mxu1 %v331_v3  ;;  %v336_v9 = vld [vmem:[#allocation7 + $0x28] sm:$0xff]   ;;  %v337_v10 = vld [vmem:[#allocation7 + $0x30] sm:$0xff]   ;;  %v338_v11 = vld [vmem:[#allocation7 + $0x38] sm:$0xff]  }
  0x3a   :  { %295 = vmatprep.subr.bf16.mxu0 %v444_v0  ;;  %303 = vmatprep.subr.bf16.mxu1 %v444_v0  ;;  %v268_v12 = vld [vmem:[%s539_s2] ss:$0 sm:$0xff]  ;;  %s446_s2 = smov [#allocation8]  }
  0x3b   :  { %v272_v20 = vld [vmem:[%s541_s4] ss:$0 sm:$0xff]  ;;  %s258_s7 = sshll.u32 %s446_s2, 4  ;;  %s259_s7 = int_to_ptr.vmem [resolvable:$true] %s258_s7 }
  0x3c   :  { %s411_s4 = scalar_lea.vmem %s259_s7, 128  ;;  %p416_p11 = scmp.lt.s32.totalorder %s259_s7, %s259_s7 }
  0x3d   :  { %296 = vmatpush3.bf16.msra.mxu0 %v330_v2  ;;  %304 = vmatpush3.bf16.msra.mxu1 %v332_v4  ;;  %p412_p10 = scmp.ne.s32.totalorder %s259_s7, %s411_s4  ;;  %p417_p12 = scmp.lt.s32.totalorder %s411_s4, %s411_s4 }
  0x3e   :  { %305 = vmatprep.subr.bf16.mxu1 %v444_v0 }
  0x3f   :  { %p418_p13 = por %p417_p12, %p416_p11 }
  0x40   :  { %298 = vmatmul.mubr.msk.bf16.vlgmr.msra.gmra.mrb[0].mxu0 %vm85_vm1, %v61_v5 }
  0x41   :  { %306 = vmatpush3.bf16.msra.mxu1 %v333_v6  ;;  %p419_p0 = pnand %p418_p13, %p412_p10 }
  0x42   :  { %307 = vmatprep.subr.bf16.mxu1 %v444_v0 }
  0x45   :  { %308 = vmatpush3.bf16.msra.mxu1 %v334_v7 }
  0x46   :  { %309 = vmatprep.subr.bf16.mxu1 %v444_v0 }
  0x49   :  { %310 = vmatpush3.bf16.msra.mxu1 %v335_v8 }
  0x4a   :  { %311 = vmatprep.subr.bf16.mxu1 %v444_v0 }
  0x4d   :  { %312 = vmatpush3.bf16.msra.mxu1 %v336_v9 }
  0x4e   :  { %313 = vmatprep.subr.bf16.mxu1 %v444_v0 }
  0x51   :  { %314 = vmatpush3.bf16.msra.mxu1 %v337_v10 }
  0x52   :  { %315 = vmatprep.subr.bf16.mxu1 %v444_v0 }
  0x55   :  { %316 = vmatpush3.bf16.msra.mxu1 %v338_v11 }
 0x113   :  { %v123_v13 = vpop.f32.mrb[0].mxu0 }
 0x114   :  { %v124_v14 = vadd.f32 %v268_v12, %v123_v13  ;;  %v299_v15 = vpop.f32.mrb[1].mxu0 }
 0x115   :  { %v126_v16 = vpop.f32.mrb[2].mxu0 }
 0x116   :  { %339 = vtanh.f32 %v124_v14  ;;  %v300_v17 = vpop.f32.mrb[3].mxu0 }
 0x120   :  { %v340_v18 = vpop.eup %339 }
 0x121   :  { %v130_v19 = vpack.c.bf16 %v340_v18, %v340_v18 }
 0x123   :  { %318 = vmatmul.mubr.bf16.vlgmr.msra.gmra.mrb[0].mxu1 %v130_v19 }
 0x1f6   :  { %v236_v21 = vpop.f32.mrb[0].mxu1 }
 0x1f7   :  { %v237_v22 = vadd.f32 %v272_v20, %v236_v21  ;;  %v319_v23 = vpop.f32.mrb[1].mxu1 }
 0x1f8   :  { %v239_v24 = vpop.f32.mrb[2].mxu1 }
 0x1f9   :  { %242 = vmax.xlane.f32.xlu0 %v237_v22  ;;  %v320_v25 = vpop.f32.mrb[3].mxu1 }
 0x286   :  { %v243_v26 = vpop.xlane.xlu0 %242 }
 0x287   :  { %v244_v27 = vsub.f32 %v237_v22, %v243_v26 }
 0x289   :  { %v245_v28 = vmul.f32 1.442695, %v244_v27 }
 0x28b   :  { %341 = vpow2.f32 %v245_v28 }
 0x295   :  { %v342_v29 = vpop.eup %341 }
 0x296   :  { %247 = vadd.xlane.f32.xlu0 %v342_v29 }
 0x323   :  { %v248_v30 = vpop.xlane.xlu0 %247 }
 0x324   :  { %343 = vrcp.f32 %v248_v30 }
 0x32e   :  { %v344_v31 = vpop.eup %343 }
 0x32f   :  { %v250_v32 = vmul.f32 %v344_v31, %v342_v29 }
 0x331   :  { %251 = vst [vmem:[#allocation8] sm:$0xff] %v250_v32 }
 0x332   :  { %422 = shalt.err (!%p419_p0)
}
 0x333   :  { %s423_s10 = scalar_lea.hbm %s542_s5, 128 }
 0x334   :  { %p424_p1 = scmp.ne.s32.totalorder %s542_s5, %s423_s10  ;;  %p427_p2 = scmp.lt.u32.totalorder %s423_s10, %s542_s5 }
 0x336   :  { %p429_p3 = pnand %p427_p2, %p424_p1 }
 0x338   :  { %432 = shalt.err (!%p429_p3)
}
 0x339   :  { %261 = dma.vmem_to_hbm [thread:$0]  %s259_s7, 128, %s542_s5, [#allocation4]  }
 0x33a   :  { %437 = dma.done.wait [#allocation4], 128  }
 0x33b   :  { %438 = vsyncadd [#allocation4], 4294967168 }
 0x33c   :  { %265 = vsyncpa [#allocation3], 1 }
 0x33d   :  { %266 = vsyncpa [#allocation6], 1 }
 0x33e   :  { %267 = vsyncpa [#allocation4], 1 }

</bundles_post_ra>
